<compile_context>
chip_gen: v6e
topology: v6e:2x2x1
jax: 0.10.0
libtpu: 0.0.40
codegen_flags: <defaults>
</compile_context>

<pallas_src>
import jax
import jax.numpy as jnp
from jax.experimental import pallas as pl
from jax.experimental.pallas import tpu as pltpu

_LANE = 128
_BLOCK_ELEMS = 8192 * _LANE             # ~1M elems per block (big, roofline-friendly)
_SINGLE_BLOCK_MAX_ELEMS = 1024 * _LANE  # <= 512 KiB f32 out -> one block is fine
_RAGGED_BLOCK_ELEMS = 512 * _LANE       # column-block width for the (1, n) ragged layout
_VMEM_LIMIT_BYTES = 32 * 1024 * 1024


def _cast_kernel(x_ref, o_ref):
    # Pure VPU elementwise cast on the whole tile.
    o_ref[...] = x_ref[...].astype(jnp.float32)


def _round_up(v, m):
    return ((v + m - 1) // m) * m


def _launch(x2d, block_shape, index_map, grid, bytes_accessed):
    rows, cols = x2d.shape
    return pl.pallas_call(
        _cast_kernel,
        out_shape=jax.ShapeDtypeStruct((rows, cols), jnp.float32),
        grid_spec=pltpu.PrefetchScalarGridSpec(
            num_scalar_prefetch=0,
            grid=grid,
            in_specs=[pl.BlockSpec(block_shape, index_map)],
            out_specs=pl.BlockSpec(block_shape, index_map),
        ),
        compiler_params=pltpu.CompilerParams(
            dimension_semantics=("parallel",),
            vmem_limit_bytes=_VMEM_LIMIT_BYTES,
        ),
        cost_estimate=pl.CostEstimate(
            flops=0, transcendentals=0, bytes_accessed=int(bytes_accessed)),
    )(x2d)


def ensure_float(x):
    """Equivalent of torch Tensor.float(): cast any dtype to float32."""
    if x.dtype == jnp.float32:
        # Identity: returning x is free; no HBM read/write needed.
        return x

    orig_shape = x.shape
    n = x.size
    if n == 0:
        return x.astype(jnp.float32)

    bytes_accessed = n * (x.dtype.itemsize + 4)

    # Widest lane-dense last dim that divides n exactly (no padding needed).
    cols = None
    for c in (8 * _LANE, 4 * _LANE, 2 * _LANE, _LANE):
        if n % c == 0:
            cols = c
            break

    if cols is not None:
        # Exact-fit (rows, cols) slab, blocks tiled along rows.
        rows = n // cols
        x2d = x.reshape(rows, cols)
        if n <= _SINGLE_BLOCK_MAX_ELEMS:
            # Tiny array: one block == whole array (full-array block is always legal).
            block_rows = rows
        else:
            # Big lane-dense blocks (~1M elems), but force grid >= 2 so the
            # in/out DMA pipeline overlaps and v7x's two TCs both get work.
            target_rows = max(16, _BLOCK_ELEMS // cols)        # multiple of 16
            half_rows = _round_up(pl.cdiv(rows, 2), 16)        # multiple of 16
            block_rows = min(target_rows, half_rows)
        grid = (pl.cdiv(rows, block_rows),)  # ragged last block is masked by Pallas
        block_shape = (block_rows, cols)
        index_map = lambda i: (i, 0)
    else:
        # n not a multiple of 128: (1, n) slab, blocks tiled along the last dim;
        # Pallas masks the ragged last block. No pad, no slice, no extra traffic.
        x2d = x.reshape(1, n)
        block_cols = n if n <= _RAGGED_BLOCK_ELEMS else _RAGGED_BLOCK_ELEMS
        grid = (pl.cdiv(n, block_cols),)
        block_shape = (1, block_cols)
        index_map = lambda i: (0, i)

    out2d = _launch(x2d, block_shape, index_map, grid, bytes_accessed)
    return out2d.reshape(orig_shape)


if __name__ == "__main__":
    key = jax.random.PRNGKey(0)

    # NCHW input like the PyTorch module; bf16 so the float() cast is meaningful.
    x = jax.random.normal(key, (2, 4, 16, 16), dtype=jnp.bfloat16)
    out = jax.block_until_ready(ensure_float(x))
    ref = x.astype(jnp.float32)
    assert out.dtype == jnp.float32
    assert out.shape == x.shape
    assert jnp.array_equal(out, ref)

    # Identity path: float32 input passes straight through.
    out_f = jax.block_until_ready(ensure_float(ref))
    assert out_f.dtype == jnp.float32
    assert jnp.array_equal(out_f, ref)

    # Ragged path (n % 128 != 0): masked (1, n) layout, no pad / no slice.
    xr = jax.random.normal(key, (3, 5, 7), dtype=jnp.bfloat16)
    out_r = jax.block_until_ready(ensure_float(xr))
    assert out_r.dtype == jnp.float32
    assert jnp.array_equal(out_r, xr.astype(jnp.float32))

    # Multi-block path with a masked partial trailing block (grid >= 2).
    xm = jax.random.normal(key, (1040, 256), dtype=jnp.bfloat16)
    out_m = jax.block_until_ready(ensure_float(xm))
    assert out_m.dtype == jnp.float32
    assert jnp.array_equal(out_m, xm.astype(jnp.float32))

    print("KERNEL_OK")
</pallas_src>

<mosaic_0001>
module attributes {stable_mosaic.version = 11 : i64} {
  func.func @_cast_kernel(%arg0: i32, %arg1: memref<2x1024xbf16, #tpu.memory_space<vmem>>, %arg2: memref<2x1024xf32, #tpu.memory_space<vmem>>) attributes {dimension_semantics = [#tpu.dimension_semantics<parallel>], iteration_bounds = array<i64: 1>, scalar_prefetch = 0 : i64, scratch_operands = 0 : i64, tpu.core_type = #tpu.core_type<tc>, window_params = [{transform_indices = @transform_0, window_bounds = array<i64: 2, 1024>}, {transform_indices = @transform_1, window_bounds = array<i64: 2, 1024>}]} {
    %c0 = arith.constant 0 : index
    %c0_0 = arith.constant 0 : index
    %0 = vector.load %arg1[%c0, %c0_0] : memref<2x1024xbf16, #tpu.memory_space<vmem>>, vector<2x1024xbf16>
    %1 = arith.extf %0 : vector<2x1024xbf16> to vector<2x1024xf32>
    %c0_1 = arith.constant 0 : index
    %c0_2 = arith.constant 0 : index
    %2 = vector.load %arg2[%c0_1, %c0_2] : memref<2x1024xf32, #tpu.memory_space<vmem>>, vector<2x1024xf32>
    tpu.vector_store %arg2[%c0_1, %c0_2], %1 {strides = array<i32>} : memref<2x1024xf32, #tpu.memory_space<vmem>>, vector<2x1024xf32>,
    return
  }
  func.func @transform_0(%arg0: i32) -> (i32, i32) {
    %c0_i32 = arith.constant 0 : i32
    %c0_i32_0 = arith.constant 0 : i32
    return %arg0, %c0_i32 : i32, i32
  }
  func.func @transform_1(%arg0: i32) -> (i32, i32) {
    %c0_i32 = arith.constant 0 : i32
    %c0_i32_0 = arith.constant 0 : i32
    return %arg0, %c0_i32 : i32, i32
  }
}

</mosaic_0001>

<bundles_post_ra>
// kernel: tpu_custom_call.1
= control target key start
LH: loop header
LB: loop body
LE: loop exit
PB: predicated region body
PF: predicated region fallthrough
CT: control target
= control target key end

     0   :  { %6 = vsyncpa [#allocation3], 0  ;;  %s105_s0 = inlined_call_operand.hbm [shape: bf16[2,1024], index: 0, kind: input, shape index: {}]   ;;  %s106_s1 = inlined_call_operand.hbm [shape: f32[2,1024], index: 1, kind: output, shape index: {}]  }
   0x1   :  { %7 = vsyncpa [#allocation4], 0  ;;  %s87_s6 = smov [#allocation2]  }
   0x2   :  { %s14_s7 = sshll.u32 %s87_s6, 4  ;;  %s15_s7 = int_to_ptr.vmem [resolvable:$true] %s14_s7 }
   0x3   :  { %s51_s8 = scalar_lea.vmem %s15_s7, 128  ;;  %p56_p1 = scmp.lt.s32.totalorder %s15_s7, %s15_s7 }
   0x4   :  { %p52_p0 = scmp.ne.s32.totalorder %s15_s7, %s51_s8  ;;  %p57_p2 = scmp.lt.s32.totalorder %s51_s8, %s51_s8 }
   0x6   :  { %p58_p3 = por %p57_p2, %p56_p1 }
   0x8   :  { %p59_p4 = pnand %p58_p3, %p52_p0 }
   0xa   :  { %62 = shalt.err (!%p59_p4)
}
   0xb   :  { %17 = dma.hbm_to_vmem [thread:$0]  %s105_s0, 128, %s15_s7, [#allocation3]  }
   0xc   :  { %83 = dma.done.wait [#allocation3], 128  }
   0xd   :  { %84 = vsyncadd [#allocation3], 4294967168  ;;  %s88_s11 = smov [#allocation5]   ;;  %v21_v0 = vld [vmem:[#allocation2] sm:$0xff] }
   0xe   :  { %s32_s12 = sshll.u32 %s88_s11, 4  ;;  %v22_v1 = vunpack.c.l.bf16 %v21_v0  ;;  %v23_v2 = vunpack.c.h.bf16 %v21_v0  ;;  %s33_s12 = int_to_ptr.vmem [resolvable:$true] %s32_s12 }
   0xf   :  { %s63_s13 = scalar_lea.vmem %s33_s12, 256  ;;  %p68_p6 = scmp.lt.s32.totalorder %s33_s12, %s33_s12 }
  0x10   :  { %24 = vst [vmem:[#allocation5] sm:$0xff] %v22_v1  ;;  %25 = vst [vmem:[#allocation5 + $0x8] sm:$0xff] %v23_v2  ;;  %p64_p5 = scmp.ne.s32.totalorder %s33_s12, %s63_s13  ;;  %p69_p7 = scmp.lt.s32.totalorder %s63_s13, %s63_s13 }
  0x12   :  { %p70_p8 = por %p69_p7, %p68_p6 }
  0x14   :  { %p71_p9 = pnand %p70_p8, %p64_p5 }
  0x16   :  { %74 = shalt.err (!%p71_p9)
}
  0x17   :  { %35 = dma.vmem_to_hbm [thread:$0]  %s33_s12, 256, %s106_s1, [#allocation4]  }
  0x18   :  { %85 = dma.done.wait [#allocation4], 256  }
  0x19   :  { %86 = vsyncadd [#allocation4], 4294967040 }
  0x1a   :  { %39 = vsyncpa [#allocation3], 1 }
  0x1b   :  { %40 = vsyncpa [#allocation4], 1 }

</bundles_post_ra>
